<compile_context>
chip_gen: v6e
topology: v6e:2x2x1
jax: 0.10.0
libtpu: 0.0.40
codegen_flags: <defaults>
</compile_context>

<pallas_src>
import functools

import jax
import jax.numpy as jnp
from jax.experimental import pallas as pl
from jax.experimental.pallas import tpu as pltpu

_LANE = 128


def _round_up(x, m):
    return ((x + m - 1) // m) * m


def _round_down(x, m):
    return (x // m) * m


def _cdiv(a, b):
    return (a + b - 1) // b


def _vmem_capacity_bytes():
    """Physical VMEM per TensorCore; conservative fallback (v7x = 64 MiB)."""
    try:
        info = pltpu.get_tpu_info()
        cap = getattr(info, "vmem_capacity_bytes", None)
        if cap:
            return int(cap)
    except Exception:
        pass
    return 64 * 1024 * 1024


def _tree_sum(leaf_fn, lo, hi):
    """Balanced pairwise sum of leaf_fn(lo) .. leaf_fn(hi-1)."""
    if hi - lo == 1:
        return leaf_fn(lo)
    mid = (lo + hi) // 2
    return _tree_sum(leaf_fn, lo, mid) + _tree_sum(leaf_fn, mid, hi)


def _lane_chunk_kernel(x_ref, o_ref, *, scale: int, c: int, inv_scale: float):
    # x_ref: (1, t_out, scale*c) lane-dense input tile
    # o_ref: (1, t_out, c)       output tile
    leaf = lambda s: x_ref[:, :, s * c:(s + 1) * c].astype(jnp.float32)
    acc = _tree_sum(leaf, 0, scale)
    o_ref[...] = (acc * inv_scale).astype(o_ref.dtype)


def _sublane_strided_kernel(x_ref, o_ref, *, scale: int, inv_scale: float):
    # x_ref: (1, t_in, C) with t_in >= t_out*scale; o_ref: (1, t_out, C)
    t_out = o_ref.shape[1]
    leaf = lambda s: x_ref[:, pl.ds(s, t_out, stride=scale), :].astype(jnp.float32)
    acc = _tree_sum(leaf, 0, scale)
    o_ref[...] = (acc * inv_scale).astype(o_ref.dtype)


def moving_avg(x, scale: int = 1):
    """Downsample series (B, L, C) -> (B, L // scale, C) by non-overlapping mean."""
    if x is None:
        return None
    scale = int(scale)
    b, l, c = x.shape

    # Identity path (module default) — do not launch a kernel for a pure copy.
    if scale <= 1:
        return x

    l_out = l // scale  # avg_pool1d truncates the remainder
    if l_out == 0:
        return jnp.zeros((b, 0, c), dtype=x.dtype)

    dtype = x.dtype
    itemsize = jnp.dtype(dtype).itemsize
    sub = max(8, 32 // itemsize)        # sublane multiple: 8 f32, 16 bf16, 32 int8
    lane_dense = c < _LANE              # small-C path: widen rows by `scale`

    # ---- VMEM-aware tile sizing (padded footprint, not nominal bytes) -------
    cap = _vmem_capacity_bytes()
    budget = min(cap // 4, 24 << 20)          # target for all pipelined buffers
    vmem_limit = int(min(cap // 2, 2 * budget))  # explicit scoped limit w/ headroom

    if lane_dense:
        in_row_elems = _round_up(scale * c, _LANE)   # contiguous, lane-padded
    else:
        in_row_elems = scale * _round_up(c, _LANE)   # `scale` input rows / out row
    out_row_elems = _round_up(c, _LANE)

    per_row_pipe = 2 * (in_row_elems + out_row_elems) * itemsize   # double-buffered
    live_partials = (scale - 1).bit_length() + 1                   # tree-sum depth
    per_row_acc = live_partials * out_row_elems * 4                # f32 partials
    t_out = max(sub, _round_down(budget // (per_row_pipe + per_row_acc), sub))

    # Ensure enough grid blocks for v7x's 2 TensorCores (and pipeline overlap).
    want_tiles = min(_cdiv(4, b), _cdiv(l_out, sub))
    if want_tiles > 1:
        t_cap = max(sub, _round_down(_cdiv(l_out, want_tiles), sub))
        t_out = min(t_out, t_cap)

    single_tile = t_out >= l_out
    if single_tile:
        t_out = l_out                   # full-extent block (always legal)
    n_tiles = _cdiv(l_out, t_out)
    grid = (b, n_tiles)
    inv_scale = 1.0 / scale

    cost = pl.CostEstimate(
        flops=int(b * l_out * scale * c),
        transcendentals=0,
        bytes_accessed=int(b * l_out * (scale + 1) * c * itemsize),
    )

    if lane_dense:
        x_in = x
        if l != l_out * scale:
            x_in = x_in[:, : l_out * scale, :]       # one-time remainder truncation
        x_in = x_in.reshape(b, l_out, scale * c)     # free row-major view
        kernel = functools.partial(
            _lane_chunk_kernel, scale=scale, c=c, inv_scale=inv_scale)
        in_spec = pl.BlockSpec((1, t_out, scale * c), lambda i, j: (i, j, 0))
    else:
        x_in = x
        t_in = l if single_tile else t_out * scale   # multiple of 8 when tiled
        kernel = functools.partial(
            _sublane_strided_kernel, scale=scale, inv_scale=inv_scale)
        in_spec = pl.BlockSpec((1, t_in, c), lambda i, j: (i, j, 0))

    return pl.pallas_call(
        kernel,
        out_shape=jax.ShapeDtypeStruct((b, l_out, c), dtype),
        grid=grid,
        in_specs=[in_spec],
        out_specs=pl.BlockSpec((1, t_out, c), lambda i, j: (i, j, 0)),
        compiler_params=pltpu.CompilerParams(
            dimension_semantics=("parallel", "parallel"),
            vmem_limit_bytes=vmem_limit,
        ),
        cost_estimate=cost,
    )(x_in)


def _ref_moving_avg(x, scale):
    """Pure-JAX reference of the PyTorch forward."""
    b, l, c = x.shape
    if scale <= 1:
        return x
    l_out = l // scale
    xt = x[:, : l_out * scale, :].reshape(b, l_out, scale, c)
    return jnp.mean(xt.astype(jnp.float32), axis=2).astype(x.dtype)


if __name__ == "__main__":
    key = jax.random.PRNGKey(0)

    # Small shapes consistent with the module: (batch, seq_len, channels)
    B, L, C = 2, 16, 8
    x = jax.random.normal(key, (B, L, C), dtype=jnp.float32)

    # scale=4 pooling path (lane-dense small-C path, single tile)
    scale = 4
    out = jax.block_until_ready(moving_avg(x, scale=scale))
    ref = _ref_moving_avg(x, scale)
    assert out.shape == (B, L // scale, C), out.shape
    assert jnp.allclose(out, ref, atol=1e-6), float(jnp.max(jnp.abs(out - ref)))

    # scale=2 pooling path
    out2 = jax.block_until_ready(moving_avg(x, scale=2))
    ref2 = _ref_moving_avg(x, 2)
    assert jnp.allclose(out2, ref2, atol=1e-6)

    # Remainder-truncation path (L % scale != 0)
    L2 = 18
    x2 = jax.random.normal(jax.random.PRNGKey(1), (B, L2, C), dtype=jnp.float32)
    out3 = jax.block_until_ready(moving_avg(x2, scale=4))
    ref3 = _ref_moving_avg(x2, 4)
    assert out3.shape == (B, L2 // 4, C), out3.shape
    assert jnp.allclose(out3, ref3, atol=1e-6)

    # bf16 smoke test (per-chunk f32 accumulation inside the kernel)
    xb = x.astype(jnp.bfloat16)
    outb = jax.block_until_ready(moving_avg(xb, scale=scale))
    refb = _ref_moving_avg(x, scale)
    assert jnp.allclose(outb.astype(jnp.float32), refb, atol=2e-2)

    # C >= 128 path (sublane-strided kernel, multi-tile grid)
    xw = jax.random.normal(jax.random.PRNGKey(2), (1, 64, 128), dtype=jnp.float32)
    outw = jax.block_until_ready(moving_avg(xw, scale=4))
    refw = _ref_moving_avg(xw, 4)
    assert outw.shape == (1, 16, 128), outw.shape
    assert jnp.allclose(outw, refw, atol=1e-5)

    # Autoformer-typical small-C, longer-L case (lane-dense, multi-tile grid)
    xs = jax.random.normal(jax.random.PRNGKey(3), (2, 4096, 7), dtype=jnp.float32)
    outs = jax.block_until_ready(moving_avg(xs, scale=4))
    refs = _ref_moving_avg(xs, 4)
    assert outs.shape == (2, 1024, 7), outs.shape
    assert jnp.allclose(outs, refs, atol=1e-5)

    # scale=1 is the module default: identity, no kernel launch.
    out1 = jax.block_until_ready(moving_avg(x, scale=1))
    assert out1 is x

    print("KERNEL_OK")
</pallas_src>

<mosaic_0001>
module attributes {stable_mosaic.version = 11 : i64} {
  func.func @_lane_chunk_kernel(%arg0: i32, %arg1: i32, %arg2: memref<1x4x32xf32, #tpu.memory_space<vmem>>, %arg3: memref<1x4x8xf32, #tpu.memory_space<vmem>>) attributes {dimension_semantics = [#tpu.dimension_semantics<parallel>, #tpu.dimension_semantics<parallel>], iteration_bounds = array<i64: 2, 1>, scalar_prefetch = 0 : i64, scratch_operands = 0 : i64, tpu.core_type = #tpu.core_type<tc>, window_params = [{transform_indices = @transform_0, window_bounds = array<i64: 1, 4, 32>}, {transform_indices = @transform_1, window_bounds = array<i64: 1, 4, 8>}]} {
    %c0 = arith.constant 0 : index
    %c0_0 = arith.constant 0 : index
    %c0_1 = arith.constant 0 : index
    %0 = vector.load %arg2[%c0, %c0_0, %c0_1] : memref<1x4x32xf32, #tpu.memory_space<vmem>>, vector<1x4x8xf32>
    %c0_2 = arith.constant 0 : index
    %c0_3 = arith.constant 0 : index
    %c8 = arith.constant 8 : index
    %1 = vector.load %arg2[%c0_2, %c0_3, %c8] : memref<1x4x32xf32, #tpu.memory_space<vmem>>, vector<1x4x8xf32>
    %2 = arith.addf %0, %1 : vector<1x4x8xf32>
    %c0_4 = arith.constant 0 : index
    %c0_5 = arith.constant 0 : index
    %c16 = arith.constant 16 : index
    %3 = vector.load %arg2[%c0_4, %c0_5, %c16] : memref<1x4x32xf32, #tpu.memory_space<vmem>>, vector<1x4x8xf32>
    %c0_6 = arith.constant 0 : index
    %c0_7 = arith.constant 0 : index
    %c24 = arith.constant 24 : index
    %4 = vector.load %arg2[%c0_6, %c0_7, %c24] : memref<1x4x32xf32, #tpu.memory_space<vmem>>, vector<1x4x8xf32>
    %5 = arith.addf %3, %4 : vector<1x4x8xf32>
    %6 = arith.addf %2, %5 : vector<1x4x8xf32>
    %cst = arith.constant 2.500000e-01 : f32
    %7 = vector.broadcast %cst : f32 to vector<1x4x8xf32>
    %8 = arith.mulf %6, %7 : vector<1x4x8xf32>
    %c0_8 = arith.constant 0 : index
    %c0_9 = arith.constant 0 : index
    %c0_10 = arith.constant 0 : index
    %9 = vector.load %arg3[%c0_8, %c0_9, %c0_10] : memref<1x4x8xf32, #tpu.memory_space<vmem>>, vector<1x4x8xf32>
    tpu.vector_store %arg3[%c0_8, %c0_9, %c0_10], %8 {strides = array<i32>} : memref<1x4x8xf32, #tpu.memory_space<vmem>>, vector<1x4x8xf32>,
    return
  }
  func.func @transform_0(%arg0: i32, %arg1: i32) -> (i32, i32, i32) {
    %c0_i32 = arith.constant 0 : i32
    %c0_i32_0 = arith.constant 0 : i32
    return %arg0, %arg1, %c0_i32 : i32, i32, i32
  }
  func.func @transform_1(%arg0: i32, %arg1: i32) -> (i32, i32, i32) {
    %c0_i32 = arith.constant 0 : i32
    %c0_i32_0 = arith.constant 0 : i32
    return %arg0, %arg1, %c0_i32 : i32, i32, i32
  }
}

</mosaic_0001>

<bundles_post_ra>
// kernel: tpu_custom_call.1
= control target key start
LH: loop header
LB: loop body
LE: loop exit
PB: predicated region body
PF: predicated region fallthrough
CT: control target
= control target key end

     0   :  { %6 = vsyncpa [#allocation3], 0  ;;  %s593_s0 = inlined_call_operand.hbm [shape: f32[2,4,32], index: 0, kind: input, shape index: {}]   ;;  %s594_s1 = inlined_call_operand.hbm [shape: f32[2,4,8], index: 1, kind: output, shape index: {}]  }
   0x1   :  { %8 = vsyncpa [#allocation3 + $0x1], 0 }
   0x2   :  { %9 = vsyncpa [#allocation4], 0 }
   0x3   :  { %11 = vsyncpa [#allocation4 + $0x1], 0  ;;  %s459_s6 = smov 0   ;;  %s461_s7 = smov 0  }
   0x4   :  { %s463_s8 = smov 0   ;;  %s465_s9 = smov 0  }
   0x5   :  { %s467_s10 = smov 0   ;;  %s469_s11 = smov 0  }
   0x6 LB: > { %s258_s12 = sadd.s32 4294967295, %s443_s11   ;;  %s259_s13 = sadd.s32 4294967294, %s443_s11   ;;  %s443_s11 = sphi %s469_s11, %s17_s11   ;;  %s439_s10 = sphi %s467_s10, %s606_s10   ;;  %s435_s9 = sphi %s465_s9, %s605_s9   ;;  %s431_s8 = sphi %s463_s8, %s604_s8   ;;  %s427_s7 = sphi %s461_s7, %s603_s7   ;;  %s423_s6 = sphi %s459_s6, %s602_s6  }
   0x7   : > { %s29_s14 = sadd.s32 1, %s439_s10  ;;  %s38_s15 = sadd.s32 1, %s431_s8 }
   0x8   : > { %p31_p0 = scmp.ge.s32.totalorder %s29_s14, 2  ;;  %p45_p1 = scmp.ne.s32.totalorder %s431_s8, %s427_s7 }
   0x9   : > { %p46_p2 = scmp.eq.s32.totalorder %s443_s11, 0  ;;  %p51_p3 = scmp.ne.s32.totalorder %s427_s7, %s423_s6 }
   0xa   : > { %s608_s14 = smov (%p31_p0, %s29_s14), 0  ;;  %p52_p5 = scmp.eq.s32.totalorder %s258_s12, 0 }
   0xb   : > { %p500_p4 = por %p46_p2, %p45_p1  ;;  %s33_s17 = ssub.s32 %s439_s10, %s608_s14 }
   0xc   : > { %p77_p6 = scmp.eq.s32.totalorder %s258_s12, 1  ;;  %p36_p7 = scmp.eq.s32.totalorder %s33_s17, 0 }
   0xd   : > { %p506_p8 = por %p52_p5, %p51_p3  ;;  %p83_p10 = scmp.eq.s32.totalorder %s259_s13, 1 }
   0xe   : > { %p510_p9 = por %p77_p6, %p45_p1  ;;  %p283_p13 = scmp.lt.s32.totalorder %s443_s11, 2 }
   0xf   : > { %s515_s20 = scalar_select %p36_p7, %s431_s8, %s38_s15  }
  0x10   : > { %p517_p11 = por %p83_p10, %p51_p3  ;;  %s103_s22 = sand.u32 1, %s431_s8  }
  0x11   : > { %s262_s23 = sshll.u32 %s103_s22, 2  ;;  %s263_s24 = sshll.u32 %s439_s10, 6 }
  0x12   : > { %s598_s21 = scalar_select %p517_p11, 1, 0 }
  0x13   : > { %s113_s27 = scalar_lea.hbm %s593_s0, %s263_s24  ;;  %s107_s28 = scalar_lea.vmem [#allocation2], %s262_s23 }
  0x14   : > { %s115_s29 = sshll.u32 %s107_s28, 4  ;;  %p530_p0 = pnand %p283_p13, %p500_p4  ;;  %s116_s29 = int_to_ptr.vmem [resolvable:$true] %s115_s29 }
  0x15   : > { %p264_p1 = scmp.ge.s32.totalorder %s443_s11, 1  ;;  %p120_p2 = scmp.lt.s32.totalorder %s443_s11, 3 }
  0x16   : > { %s104_s2 = scalar_lea.sflag [#allocation3], %s103_s22  ;;  %p337_p3 = pneg %p530_p0 }
  0x17   : > { %s348_s3 = scalar_lea.vmem %s116_s29, 64  ;;  %s445_s4 = smov [#allocation2]  }
  0x18   : > { %p349_p5 = scmp.ne.s32.totalorder %s116_s29, %s348_s3  ;;  %s353_s5 = sshll.u32 %s445_s4, 4  ;;  %s354_s5 = int_to_ptr.vmem [resolvable:$false] %s353_s5 }
  0x19   : > { %s355_s12 = scalar_lea.vmem %s354_s5, 128  ;;  %p356_p10 = scmp.lt.s32.totalorder %s116_s29, %s354_s5 }
  0x1a   : > { %p351_p6 = pnand %p349_p5, %p337_p3  ;;  %p357_p12 = scmp.lt.s32.totalorder %s355_s12, %s348_s3 }
  0x1c   : > { %p352_p7 = pneg %p351_p6  ;;  %p358_p4 = por %p357_p12, %p356_p10 }
  0x1e   : > { %p359_p13 = pnand %p358_p4, %p352_p7 }
  0x20   : > { %362 = shalt.err (!%p359_p13)
}
  0x21   : > { %278 = dma.hbm_to_vmem [thread:$0]  (!%p530_p0), %s113_s27, 64, %s116_s29, %s104_s2  }
  0x22   : > { %p121_p11 = pnand %p264_p1, %p120_p2 }
  0x23   : > { %s545_s13 = sand.u32 (!%p121_p11), 1, %s427_s7  }
  0x24   : > { %124 = sbr.rel (%p121_p11) target bundleno = 292 (0x124), region = 24  ;;  %s265_s15 = sshll.u32 (!%p121_p11), %s545_s13, 2 }
  0x25   : > { %s127_s16 = scalar_lea.sflag (!%p121_p11), [#allocation3], %s545_s13  ;;  %s130_s17 = scalar_lea.vmem (!%p121_p11), [#allocation2], %s265_s15 }
  0x29   : > { %414 = dma.done.wait (%p506_p8), %s127_s16, 64  }
  0x2a   : > { %416 = vsyncadd (%p506_p8), %s127_s16, 4294967232  ;;  %v149_v0 = vld [vmem:[%s130_s17] sm:$0xf]  ;;  %s446_s22 = smov 120   ;;  %s447_s23 = smov 112   ;;  %vm161_vm0 = vcmask 60416  }
  0x2b   : > { %151 = vrot.lane.b32.xlu0 %v149_v0, %s446_s22  ;;  %s268_s24 = sshll.u32 %s435_s9, 6  ;;  %s148_s25 = scalar_lea.vmem [#allocation5], %s265_s15 }
  0x2c   : > { %s178_s26 = sshll.u32 %s148_s25, 4  ;;  %s176_s28 = scalar_lea.hbm %s594_s1, %s268_s24  ;;  %s179_s26 = int_to_ptr.vmem [resolvable:$true] %s178_s26 }
  0x2d   : > { %s164_s29 = scalar_lea.sflag [#allocation4], %s545_s13  ;;  %s363_s30 = scalar_lea.vmem %s179_s26, 64 }
  0x2e   : > { %p364_p8 = scmp.ne.s32.totalorder %s179_s26, %s363_s30  ;;  %s448_s2 = smov [#allocation5]  }
  0x2f   : > { %s367_s3 = sshll.u32 %s448_s2, 4  ;;  %s368_s3 = int_to_ptr.vmem [resolvable:$false] %s367_s3 }
  0x30   : > { %p365_p11 = pnand %p364_p8, %p510_p9  ;;  %s369_s9 = scalar_lea.vmem %s368_s3, 128 }
  0x31   : > { %p370_p0 = scmp.lt.s32.totalorder %s179_s26, %s368_s3  ;;  %p371_p1 = scmp.lt.s32.totalorder %s369_s9, %s363_s30 }
  0x32   : > { %p366_p12 = pneg %p365_p11 }
  0x33   : > { %p372_p2 = por %p371_p1, %p370_p0 }
  0x35   : > { %p373_p3 = pnand %p372_p2, %p366_p12 }
  0x9d   : > { %v152_v1 = vpop.permute.xlu0 %151 }
  0x9e   : > { %v154_v2 = vadd.f32 %v152_v1, %v149_v0 }
  0xa0   : > { %156 = vrot.lane.b32.xlu0 %v154_v2, %s447_s23 }
 0x112   : > { %v157_v3 = vpop.permute.xlu0 %156 }
 0x113   : > { %v159_v4 = vadd.f32 %v157_v3, %v154_v2 }
 0x115   : > { %v160_v5 = vmul.f32 0.25, %v159_v4 }
 0x117   : > { %162 = vst.msk [vmem:[%s148_s25] sm:$0xf] %vm161_vm0, %v160_v5 }
 0x118   : > { %376 = shalt.err (!%p373_p3)
}
 0x119   : > { %s377_s4 = scalar_lea.hbm %s176_s28, 64  ;;  %s381_s13 = scalar_lea.hbm %s594_s1, 128 }
 0x11a   : > { %p378_p5 = scmp.ne.s32.totalorder %s176_s28, %s377_s4  ;;  %p382_p10 = scmp.lt.s32.totalorder %s176_s28, %s594_s1 }
 0x11b   : > { %p383_p4 = scmp.lt.s32.totalorder %s381_s13, %s377_s4 }
 0x11c   : > { %p379_p6 = pnand %p378_p5, %p510_p9 }
 0x11d   : > { %p384_p13 = por %p383_p4, %p382_p10 }
 0x11e   : > { %p380_p7 = pneg %p379_p6 }
 0x120   : > { %p385_p8 = pnand %p384_p13, %p380_p7 }
 0x122   : > { %388 = shalt.err (!%p385_p8)
}
 0x123   : > { %273 = dma.vmem_to_hbm [thread:$0]  (%p510_p9), %s179_s26, 64, %s176_s28, %s164_s29  }
 0x124 PF: > { %s190_s17 = sand.u32 1, %s423_s6   ;;  %p600_p11 = scmp.ne.s32.totalorder %s598_s21, 0 }
 0x125   : > { %p601_p12 = scmp.ge.s32.totalorder %s443_s11, 2  ;;  %s191_s22 = scalar_lea.sflag [#allocation4], %s190_s17 }
 0x127   : > { %p280_p0 = pnand %p601_p12, %p600_p11 }
 0x129   : > { %p281_p1 = pneg %p280_p0 }
 0x12b   : > { %418 = dma.done.wait (%p281_p1), %s191_s22, 64  }
 0x12c   : > { %420 = vsyncadd (%p281_p1), %s191_s22, 4294967232  ;;  %s17_s11 = sadd.s32 1, %s443_s11   ;;  %s602_s6 = smov %s427_s7 }
 0x12d   : > { %p14_p2 = scmp.ge.s32.totalorder %s17_s11, 4   ;;  %s603_s7 = smov %s431_s8 }
 0x12e   : > { %s604_s8 = smov %s515_s20  ;;  %s605_s9 = smov %s439_s10 }
 0x12f   : > { %s606_s10 = smov %s608_s14  ;;  %16 = sbr.rel (!%p14_p2) target bundleno = 6 (0x6), region = 69 }
 0x134   :  { %196 = vsyncpa [#allocation3], 1 }
 0x135   :  { %198 = vsyncpa [#allocation3 + $0x1], 1 }
 0x136   :  { %199 = vsyncpa [#allocation4], 1 }
 0x137   :  { %201 = vsyncpa [#allocation4 + $0x1], 1 }

</bundles_post_ra>
